<compile_context>
chip_gen: v7x
topology: tpu7x:2x2x1
jax: 0.10.0
libtpu: 0.0.40
codegen_flags: <defaults>
</compile_context>

<pallas_src>
import functools

import jax
import jax.numpy as jnp
from jax.experimental import pallas as pl
from jax.experimental.pallas import tpu as pltpu


BN_EPS = 1e-5
L2_EPS = 1e-12
LANE = 128
TILE_B = 256      # >=256 rows fills the 256-wide MXU on v6e/v7x; fine on v5e.


# ----------------------------------------------------------------------------
# helpers
# ----------------------------------------------------------------------------
def _round_up(n, m):
    return ((n + m - 1) // m) * m


def _pad2(a, rows, cols):
    pr, pc = rows - a.shape[0], cols - a.shape[1]
    if pr == 0 and pc == 0:
        return a
    return jnp.pad(a, ((0, pr), (0, pc)))


def _vmem_budget_bytes():
    """Generation-aware scoped-VMEM limit with headroom for double buffers."""
    default = 32 * 1024 * 1024
    try:
        cap = int(getattr(pltpu.get_tpu_info(), "vmem_capacity_bytes", 0) or 0)
    except Exception:
        return default
    if cap <= 0:
        return default
    # ~40 MiB on a 64 MiB part (v7x), ~80 MiB on 128 MiB parts (v5e/v6e).
    return int(min(cap * 5 // 8, 96 * 1024 * 1024))


# ----------------------------------------------------------------------------
# kernels
# ----------------------------------------------------------------------------
def _accumulate_bn_stats(st_ref, gb_ref, z, inv_n):
    """Accumulate [sum(z); sum(z*z)] across batch tiles in a resident [2, D]
    output; on the last tile convert in place to [scale; shift]."""
    i = pl.program_id(0)

    @pl.when(i == 0)
    def _init():
        st_ref[...] = jnp.zeros_like(st_ref)

    # NOTE: two XLU reductions per layer; an MXU ones-row matmul could fuse
    # them but costs sumsq precision — keep simple.
    st_ref[0:1, :] = st_ref[0:1, :] + jnp.sum(z, axis=0, keepdims=True)
    st_ref[1:2, :] = st_ref[1:2, :] + jnp.sum(z * z, axis=0, keepdims=True)

    @pl.when(i == pl.num_programs(0) - 1)
    def _finalize():
        mu = st_ref[0:1, :] * inv_n
        var = jnp.maximum(st_ref[1:2, :] * inv_n - mu * mu, 0.0)
        s = gb_ref[0:1, :] * jax.lax.rsqrt(var + BN_EPS)   # EUP slot
        st_ref[0:1, :] = s
        st_ref[1:2, :] = gb_ref[1:2, :] - mu * s


def _linear_stats_kernel(x_ref, w_ref, gb_ref, z_ref, st_ref, *, inv_n):
    """z = x @ W (bias dropped: cancels in training-mode BN) + BN stats."""
    x = x_ref[...].astype(jnp.bfloat16)          # f32 -> bf16 for the MXU
    z = jnp.dot(x, w_ref[...], preferred_element_type=jnp.float32)
    z_ref[...] = z
    _accumulate_bn_stats(st_ref, gb_ref, z, inv_n)


def _bn_linear_stats_kernel(z_in_ref, st_in_ref, w_ref, gb_ref,
                            z_out_ref, st_out_ref, *,
                            inv_n, tile_b, batch_true, need_mask):
    """h = relu(z_prev*scale + shift); z = h @ W; accumulate next-layer stats."""
    s = st_in_ref[0:1, :]
    t = st_in_ref[1:2, :]
    h = jnp.maximum(z_in_ref[...] * s + t, 0.0)
    if need_mask:
        # Batch-padding rows must stay exactly zero so they do not pollute
        # the next layer's BatchNorm statistics.
        rows = (jax.lax.broadcasted_iota(jnp.int32, (tile_b, 1), 0)
                + pl.program_id(0) * tile_b)
        h = jnp.where(rows < batch_true, h, 0.0)
    z = jnp.dot(h.astype(jnp.bfloat16), w_ref[...],
                preferred_element_type=jnp.float32)
    z_out_ref[...] = z
    _accumulate_bn_stats(st_out_ref, gb_ref, z, inv_n)


def _bn_head_kernel(z_ref, st_ref, wh_ref, bh_ref, out_ref):
    """h = relu(z*scale + shift); r = h @ Wh + bh; out = L2-normalize(r)."""
    s = st_ref[0:1, :]
    t = st_ref[1:2, :]
    h = jnp.maximum(z_ref[...] * s + t, 0.0).astype(jnp.bfloat16)
    r = jnp.dot(h, wh_ref[...], preferred_element_type=jnp.float32)
    r = r + bh_ref[...]
    sumsq = jnp.sum(r * r, axis=-1, keepdims=True)
    inv_norm = jax.lax.rsqrt(jnp.maximum(sumsq, L2_EPS * L2_EPS))
    out_ref[...] = (r * inv_norm).astype(out_ref.dtype)


# ----------------------------------------------------------------------------
# pallas_call builders
# ----------------------------------------------------------------------------
def _linear_stats_call(x, w, gb, *, tile_b, nb, inv_n, vmem_limit):
    b_p, d_in = x.shape
    d_out = w.shape[1]
    kernel = functools.partial(_linear_stats_kernel, inv_n=inv_n)
    return pl.pallas_call(
        kernel,
        grid=(nb,),
        in_specs=[pl.BlockSpec((tile_b, d_in), lambda i: (i, 0)),   # x: streamed
                  pl.BlockSpec((d_in, d_out), lambda i: (0, 0)),    # W: resident
                  pl.BlockSpec((2, d_out), lambda i: (0, 0))],      # gamma/beta
        out_specs=(pl.BlockSpec((tile_b, d_out), lambda i: (i, 0)),  # z
                   pl.BlockSpec((2, d_out), lambda i: (0, 0))),      # stats acc
        out_shape=(jax.ShapeDtypeStruct((b_p, d_out), jnp.float32),
                   jax.ShapeDtypeStruct((2, d_out), jnp.float32)),
        compiler_params=pltpu.CompilerParams(
            dimension_semantics=("arbitrary",),     # stats accumulate over tiles
            vmem_limit_bytes=vmem_limit),
        cost_estimate=pl.CostEstimate(
            flops=2 * b_p * d_in * d_out,
            transcendentals=d_out,
            bytes_accessed=(b_p * d_in * 4 + d_in * d_out * 2
                            + b_p * d_out * 4 + 4 * d_out * 4)),
    )(x, w, gb)


def _bn_linear_stats_call(z_in, st_in, w, gb, *, tile_b, nb, inv_n,
                          batch_true, need_mask, vmem_limit):
    b_p, d_in = z_in.shape
    d_out = w.shape[1]
    kernel = functools.partial(_bn_linear_stats_kernel, inv_n=inv_n,
                               tile_b=tile_b, batch_true=batch_true,
                               need_mask=need_mask)
    return pl.pallas_call(
        kernel,
        grid=(nb,),
        in_specs=[pl.BlockSpec((tile_b, d_in), lambda i: (i, 0)),   # z_prev
                  pl.BlockSpec((2, d_in), lambda i: (0, 0)),        # scale/shift
                  pl.BlockSpec((d_in, d_out), lambda i: (0, 0)),    # W: resident
                  pl.BlockSpec((2, d_out), lambda i: (0, 0))],      # gamma/beta
        out_specs=(pl.BlockSpec((tile_b, d_out), lambda i: (i, 0)),
                   pl.BlockSpec((2, d_out), lambda i: (0, 0))),
        out_shape=(jax.ShapeDtypeStruct((b_p, d_out), jnp.float32),
                   jax.ShapeDtypeStruct((2, d_out), jnp.float32)),
        compiler_params=pltpu.CompilerParams(
            dimension_semantics=("arbitrary",),
            vmem_limit_bytes=vmem_limit),
        cost_estimate=pl.CostEstimate(
            flops=2 * b_p * d_in * d_out + 4 * b_p * d_in,
            transcendentals=d_out,
            bytes_accessed=(b_p * d_in * 4 + d_in * d_out * 2
                            + b_p * d_out * 4 + (2 * d_in + 4 * d_out) * 4)),
    )(z_in, st_in, w, gb)


def _bn_head_call(z_in, st_in, wh, bh, *, tile_b, nb, vmem_limit):
    b_p, d_in = z_in.shape
    d_out = wh.shape[1]
    return pl.pallas_call(
        _bn_head_kernel,
        grid=(nb,),
        in_specs=[pl.BlockSpec((tile_b, d_in), lambda i: (i, 0)),
                  pl.BlockSpec((2, d_in), lambda i: (0, 0)),
                  pl.BlockSpec((d_in, d_out), lambda i: (0, 0)),
                  pl.BlockSpec((1, d_out), lambda i: (0, 0))],
        out_specs=pl.BlockSpec((tile_b, d_out), lambda i: (i, 0)),
        out_shape=jax.ShapeDtypeStruct((b_p, d_out), jnp.float32),
        compiler_params=pltpu.CompilerParams(
            dimension_semantics=("parallel",),   # no cross-tile state: megacore OK
            vmem_limit_bytes=vmem_limit),
        cost_estimate=pl.CostEstimate(
            flops=2 * b_p * d_in * d_out + 6 * b_p * d_in,
            transcendentals=b_p,
            bytes_accessed=(b_p * d_in * 4 + d_in * d_out * 2
                            + b_p * d_out * 4 + (2 * d_in + d_out) * 4)),
    )(z_in, st_in, wh, bh)


# ----------------------------------------------------------------------------
# parameter preparation (done ONCE, outside the jitted forward)
# ----------------------------------------------------------------------------
def prepare_params(params, in_dim, dims, feature_dim):
    """Pad feature dims to LANE multiples, cast matmul weights to bf16, pack
    gamma/beta into one [2, D] slab. b1/b2/b3 are intentionally dropped (exact
    cancellation in training-mode BatchNorm); the head bias bh is kept."""
    prep = {}
    d_in_p = _round_up(in_dim, LANE)
    for i, d_out in enumerate(dims, start=1):
        d_out_p = _round_up(d_out, LANE)
        prep[f"w{i}"] = _pad2(params[f"w{i}"], d_in_p, d_out_p).astype(jnp.bfloat16)
        prep[f"gb{i}"] = _pad2(
            jnp.concatenate([params[f"g{i}"], params[f"be{i}"]], axis=0),
            2, d_out_p).astype(jnp.float32)
        d_in_p = d_out_p
    fp = _round_up(feature_dim, LANE)
    prep["wh"] = _pad2(params["wh"], d_in_p, fp).astype(jnp.bfloat16)
    prep["bh"] = _pad2(params["bh"], 1, fp).astype(jnp.float32)
    return jax.device_put(prep)


# ----------------------------------------------------------------------------
# forward
# ----------------------------------------------------------------------------
@functools.partial(jax.jit, static_argnames=("feature_dim",))
def npid_forward(x, prep, feature_dim):
    """x: [B, in_dim] float32. prep: output of prepare_params (padded/bf16)."""
    b, _ = x.shape
    in_p = prep["w1"].shape[0]
    fp = prep["wh"].shape[1]

    n_layers = 0
    while f"w{n_layers + 1}" in prep:
        n_layers += 1

    tile_b = TILE_B if b > TILE_B else _round_up(b, 16)
    b_p = _round_up(b, tile_b)
    nb = b_p // tile_b
    need_mask = b_p != b
    inv_n = 1.0 / float(b)        # BN statistics divide by the TRUE batch size

    xp = _pad2(x.astype(jnp.float32), b_p, in_p)   # bf16 cast happens in-kernel
    vmem_limit = _vmem_budget_bytes()

    z, st = _linear_stats_call(xp, prep["w1"], prep["gb1"],
                               tile_b=tile_b, nb=nb, inv_n=inv_n,
                               vmem_limit=vmem_limit)
    for i in range(2, n_layers + 1):
        z, st = _bn_linear_stats_call(z, st, prep[f"w{i}"], prep[f"gb{i}"],
                                      tile_b=tile_b, nb=nb, inv_n=inv_n,
                                      batch_true=b, need_mask=need_mask,
                                      vmem_limit=vmem_limit)
    out = _bn_head_call(z, st, prep["wh"], prep["bh"],
                        tile_b=tile_b, nb=nb, vmem_limit=vmem_limit)

    if b_p != b or fp != feature_dim:
        out = out[:b, :feature_dim]
    return out


# ----------------------------------------------------------------------------
# synthetic parameters + pure-JAX reference (full PyTorch semantics)
# ----------------------------------------------------------------------------
def init_params(key, in_dim, dims, feature_dim):
    """Deterministic synthetic parameters. Linear weights stored as [in, out]."""
    params = {}
    d_in = in_dim
    keys = jax.random.split(key, 2 * len(dims) + 2)
    ki = 0
    for i, d_out in enumerate(dims, start=1):
        bound = 1.0 / jnp.sqrt(jnp.float32(d_in))
        params[f"w{i}"] = jax.random.uniform(
            keys[ki], (d_in, d_out), jnp.float32, -bound, bound)
        ki += 1
        params[f"b{i}"] = jax.random.uniform(
            keys[ki], (1, d_out), jnp.float32, -bound, bound)
        ki += 1
        params[f"g{i}"] = jnp.ones((1, d_out), jnp.float32)    # BN gamma
        params[f"be{i}"] = jnp.zeros((1, d_out), jnp.float32)  # BN beta
        d_in = d_out
    bound = 1.0 / jnp.sqrt(jnp.float32(d_in))
    params["wh"] = jax.random.uniform(
        keys[ki], (d_in, feature_dim), jnp.float32, -bound, bound)
    ki += 1
    params["bh"] = jax.random.uniform(
        keys[ki], (1, feature_dim), jnp.float32, -bound, bound)
    return params


def npid_forward_reference(x, params, matmul_dtype):
    """Pure-JAX reference with full PyTorch semantics (incl. pre-BN biases).
    matmul_dtype matches the kernel's operand precision for tight checks."""
    h = x
    i = 1
    while f"w{i}" in params:
        w = params[f"w{i}"]
        z = jnp.dot(h.astype(matmul_dtype), w.astype(matmul_dtype),
                    preferred_element_type=jnp.float32) + params[f"b{i}"]
        mu = jnp.mean(z, axis=0, keepdims=True)
        var = jnp.mean((z - mu) ** 2, axis=0, keepdims=True)
        z = (z - mu) / jnp.sqrt(var + BN_EPS)
        z = z * params[f"g{i}"] + params[f"be{i}"]
        h = jnp.maximum(z, 0.0)
        i += 1
    r = jnp.dot(h.astype(matmul_dtype), params["wh"].astype(matmul_dtype),
                preferred_element_type=jnp.float32) + params["bh"]
    norm = jnp.sqrt(jnp.sum(r * r, axis=-1, keepdims=True))
    return r / jnp.maximum(norm, L2_EPS)


# ----------------------------------------------------------------------------
if __name__ == "__main__":
    def run_case(key, batch, in_dim, dims, feature_dim):
        kx, kp = jax.random.split(key)
        x = jax.random.normal(kx, (batch, in_dim), jnp.float32)
        params = init_params(kp, in_dim, dims, feature_dim)
        prep = prepare_params(params, in_dim, dims, feature_dim)

        out = jax.block_until_ready(npid_forward(x, prep, feature_dim=feature_dim))
        assert out.shape == (batch, feature_dim)

        # Tight check vs a reference with the same precision policy as the
        # kernel (bf16 matmul operands, f32 accumulate/stats/normalize).
        ref_bf16 = npid_forward_reference(x, params, jnp.bfloat16)
        assert jnp.allclose(out, ref_bf16, atol=2e-3, rtol=2e-3), \
            f"mismatch vs bf16-matched reference (B={batch})"
        # Loose sanity check vs the full-f32 reference.
        ref_f32 = npid_forward_reference(x, params, jnp.float32)
        assert jnp.allclose(out, ref_f32, atol=1e-1, rtol=1e-1), \
            f"bf16 drift vs f32 reference too large (B={batch})"

    root = jax.random.PRNGKey(0)
    k1, k2, km = jax.random.split(root, 3)

    # Case 1: small shapes (single batch tile, no batch padding).
    run_case(k1, batch=32, in_dim=32, dims=(64, 32, 16), feature_dim=8)
    # Case 2: multi-tile batch + batch padding (exercises the accumulator BN
    # path across tiles, the padded-row mask, and the parallel head axis).
    run_case(k2, batch=272, in_dim=48, dims=(96, 64, 32), feature_dim=24)

    # Memory-bank buffer mirrors the module state but is unused in forward().
    feature_dim, memory_length, nce_m = 8, 128, 0.5
    stdv = 1.0 / jnp.sqrt(jnp.float32(feature_dim) / 3.0)
    memory = jax.random.uniform(km, (memory_length, feature_dim),
                                jnp.float32, -stdv, stdv)
    _ = (memory, nce_m)
    # TODO(synk): update_memory() scatter/renormalize of the memory bank is not
    # part of forward() and is not implemented as a kernel.

    print("KERNEL_OK")
</pallas_src>

<mosaic_0001>
module attributes {stable_mosaic.version = 11 : i64} {
  func.func @_bn_head_kernel(%arg0: i32, %arg1: memref<32x128xf32, #tpu.memory_space<vmem>>, %arg2: memref<2x128xf32, #tpu.memory_space<vmem>>, %arg3: memref<128x128xbf16, #tpu.memory_space<vmem>>, %arg4: memref<1x128xf32, #tpu.memory_space<vmem>>, %arg5: memref<32x128xf32, #tpu.memory_space<vmem>>) attributes {dimension_semantics = [#tpu.dimension_semantics<parallel>], iteration_bounds = array<i64: 1>, scalar_prefetch = 0 : i64, scratch_operands = 0 : i64, tpu.core_type = #tpu.core_type<tc>, window_params = [{transform_indices = @transform_0, window_bounds = array<i64: 32, 128>}, {pipeline_mode = #tpu.pipeline_mode<synchronous>, transform_indices = @transform_1, window_bounds = array<i64: 2, 128>}, {pipeline_mode = #tpu.pipeline_mode<synchronous>, transform_indices = @transform_2, window_bounds = array<i64: 128, 128>}, {pipeline_mode = #tpu.pipeline_mode<synchronous>, transform_indices = @transform_3, window_bounds = array<i64: 1, 128>}, {transform_indices = @transform_4, window_bounds = array<i64: 32, 128>}]} {
    %c0 = arith.constant 0 : index
    %c0_0 = arith.constant 0 : index
    %0 = vector.load %arg2[%c0, %c0_0] : memref<2x128xf32, #tpu.memory_space<vmem>>, vector<1x128xf32>
    %c1 = arith.constant 1 : index
    %c0_1 = arith.constant 0 : index
    %1 = vector.load %arg2[%c1, %c0_1] : memref<2x128xf32, #tpu.memory_space<vmem>>, vector<1x128xf32>
    %c0_2 = arith.constant 0 : index
    %c0_3 = arith.constant 0 : index
    %2 = vector.load %arg1[%c0_2, %c0_3] : memref<32x128xf32, #tpu.memory_space<vmem>>, vector<32x128xf32>
    %3 = vector.broadcast %0 : vector<1x128xf32> to vector<32x128xf32>
    %4 = arith.mulf %2, %3 : vector<32x128xf32>
    %5 = vector.broadcast %1 : vector<1x128xf32> to vector<32x128xf32>
    %6 = arith.addf %4, %5 : vector<32x128xf32>
    %cst = arith.constant 0.000000e+00 : f32
    %7 = vector.broadcast %cst : f32 to vector<32x128xf32>
    %8 = arith.maximumf %6, %7 : vector<32x128xf32>
    %9 = arith.truncf %8 : vector<32x128xf32> to vector<32x128xbf16>
    %c0_4 = arith.constant 0 : index
    %c0_5 = arith.constant 0 : index
    %10 = vector.load %arg3[%c0_4, %c0_5] : memref<128x128xbf16, #tpu.memory_space<vmem>>, vector<128x128xbf16>
    %cst_6 = arith.constant dense<0.000000e+00> : vector<32x128xf32>
    %11 = tpu.matmul %9, %10, %cst_6 {dimension_numbers = #tpu.dot_dimension_numbers<[1], [0], [0], [1], [0, 0, 1, 1], [], []>} : vector<32x128xbf16>, vector<128x128xbf16>, vector<32x128xf32> -> vector<32x128xf32>
    %c0_7 = arith.constant 0 : index
    %c0_8 = arith.constant 0 : index
    %12 = vector.load %arg4[%c0_7, %c0_8] : memref<1x128xf32, #tpu.memory_space<vmem>>, vector<1x128xf32>
    %13 = vector.broadcast %12 : vector<1x128xf32> to vector<32x128xf32>
    %14 = arith.addf %11, %13 : vector<32x128xf32>
    %15 = arith.mulf %14, %14 : vector<32x128xf32>
    %cst_9 = arith.constant dense<0.000000e+00> : vector<32xf32>
    %16 = vector.multi_reduction <add>, %15, %cst_9 [1] : vector<32x128xf32> to vector<32xf32>
    %17 = vector.shape_cast %16 : vector<32xf32> to vector<32x1xf32>
    %cst_10 = arith.constant 1.000000e-24 : f32
    %18 = vector.broadcast %cst_10 : f32 to vector<32x1xf32>
    %19 = arith.maximumf %17, %18 : vector<32x1xf32>
    %20 = math.rsqrt %19 : vector<32x1xf32>
    %21 = vector.broadcast %20 : vector<32x1xf32> to vector<32x128xf32>
    %22 = arith.mulf %14, %21 : vector<32x128xf32>
    %c0_11 = arith.constant 0 : index
    %c0_12 = arith.constant 0 : index
    %23 = vector.load %arg5[%c0_11, %c0_12] : memref<32x128xf32, #tpu.memory_space<vmem>>, vector<32x128xf32>
    tpu.vector_store %arg5[%c0_11, %c0_12], %22 {strides = array<i32>} : memref<32x128xf32, #tpu.memory_space<vmem>>, vector<32x128xf32>,
    return
  }
  func.func @transform_0(%arg0: i32) -> (i32, i32) {
    %c0_i32 = arith.constant 0 : i32
    %c0_i32_0 = arith.constant 0 : i32
    return %arg0, %c0_i32 : i32, i32
  }
  func.func @transform_1(%arg0: i32) -> (i32, i32) {
    %c0_i32 = arith.constant 0 : i32
    %c0_i32_0 = arith.constant 0 : i32
    %c0_i32_1 = arith.constant 0 : i32
    return %c0_i32, %c0_i32_0 : i32, i32
  }
  func.func @transform_2(%arg0: i32) -> (i32, i32) {
    %c0_i32 = arith.constant 0 : i32
    %c0_i32_0 = arith.constant 0 : i32
    %c0_i32_1 = arith.constant 0 : i32
    return %c0_i32, %c0_i32_0 : i32, i32
  }
  func.func @transform_3(%arg0: i32) -> (i32, i32) {
    %c0_i32 = arith.constant 0 : i32
    %c0_i32_0 = arith.constant 0 : i32
    %c0_i32_1 = arith.constant 0 : i32
    return %c0_i32, %c0_i32_0 : i32, i32
  }
  func.func @transform_4(%arg0: i32) -> (i32, i32) {
    %c0_i32 = arith.constant 0 : i32
    %c0_i32_0 = arith.constant 0 : i32
    return %arg0, %c0_i32 : i32, i32
  }
}

module attributes {stable_mosaic.version = 11 : i64} {
  func.func @_linear_stats_kernel(%arg0: i32, %arg1: memref<32x128xf32, #tpu.memory_space<vmem>>, %arg2: memref<128x128xbf16, #tpu.memory_space<vmem>>, %arg3: memref<2x128xf32, #tpu.memory_space<vmem>>, %arg4: memref<32x128xf32, #tpu.memory_space<vmem>>, %arg5: memref<2x128xf32, #tpu.memory_space<vmem>>) attributes {dimension_semantics = [#tpu.dimension_semantics<arbitrary>], iteration_bounds = array<i64: 1>, scalar_prefetch = 0 : i64, scratch_operands = 0 : i64, tpu.core_type = #tpu.core_type<tc>, window_params = [{transform_indices = @transform_0, window_bounds = array<i64: 32, 128>}, {pipeline_mode = #tpu.pipeline_mode<synchronous>, transform_indices = @transform_1, window_bounds = array<i64: 128, 128>}, {pipeline_mode = #tpu.pipeline_mode<synchronous>, transform_indices = @transform_2, window_bounds = array<i64: 2, 128>}, {transform_indices = @transform_3, window_bounds = array<i64: 32, 128>}, {pipeline_mode = #tpu.pipeline_mode<synchronous>, transform_indices = @transform_4, window_bounds = array<i64: 2, 128>}]} {
    %c0 = arith.constant 0 : index
    %c0_0 = arith.constant 0 : index
    %0 = vector.load %arg1[%c0, %c0_0] : memref<32x128xf32, #tpu.memory_space<vmem>>, vector<32x128xf32>
    %1 = arith.truncf %0 : vector<32x128xf32> to vector<32x128xbf16>
    %c0_1 = arith.constant 0 : index
    %c0_2 = arith.constant 0 : index
    %2 = vector.load %arg2[%c0_1, %c0_2] : memref<128x128xbf16, #tpu.memory_space<vmem>>, vector<128x128xbf16>
    %cst = arith.constant dense<0.000000e+00> : vector<32x128xf32>
    %3 = tpu.matmul %1, %2, %cst {dimension_numbers = #tpu.dot_dimension_numbers<[1], [0], [0], [1], [0, 0, 1, 1], [], []>} : vector<32x128xbf16>, vector<128x128xbf16>, vector<32x128xf32> -> vector<32x128xf32>
    %c0_3 = arith.constant 0 : index
    %c0_4 = arith.constant 0 : index
    %4 = vector.load %arg4[%c0_3, %c0_4] : memref<32x128xf32, #tpu.memory_space<vmem>>, vector<32x128xf32>
    tpu.vector_store %arg4[%c0_3, %c0_4], %3 {strides = array<i32>} : memref<32x128xf32, #tpu.memory_space<vmem>>, vector<32x128xf32>,
    %c0_i32 = arith.constant 0 : i32
    %5 = arith.cmpi eq, %arg0, %c0_i32 : i32
    %6 = arith.extui %5 : i1 to i32
    %c0_i32_5 = arith.constant 0 : i32
    %7 = arith.cmpi ne, %6, %c0_i32_5 : i32
    scf.if %7 {
      %cst_17 = arith.constant 0.000000e+00 : f32
      %22 = vector.broadcast %cst_17 : f32 to vector<2x128xf32>
      %c0_18 = arith.constant 0 : index
      %c0_19 = arith.constant 0 : index
      %23 = vector.load %arg5[%c0_18, %c0_19] : memref<2x128xf32, #tpu.memory_space<vmem>>, vector<2x128xf32>
      tpu.vector_store %arg5[%c0_18, %c0_19], %22 {strides = array<i32>} : memref<2x128xf32, #tpu.memory_space<vmem>>, vector<2x128xf32>,
    } else {
    }
    %c0_6 = arith.constant 0 : index
    %c0_7 = arith.constant 0 : index
    %8 = vector.load %arg5[%c0_6, %c0_7] : memref<2x128xf32, #tpu.memory_space<vmem>>, vector<1x128xf32>
    %cst_8 = arith.constant dense<0.000000e+00> : vector<128xf32>
    %9 = vector.multi_reduction <add>, %3, %cst_8 [0] : vector<32x128xf32> to vector<128xf32>
    %10 = vector.shape_cast %9 : vector<128xf32> to vector<1x128xf32>
    %11 = arith.addf %8, %10 : vector<1x128xf32>
    %c0_9 = arith.constant 0 : index
    %c0_10 = arith.constant 0 : index
    %12 = vector.load %arg5[%c0_9, %c0_10] : memref<2x128xf32, #tpu.memory_space<vmem>>, vector<1x128xf32>
    tpu.vector_store %arg5[%c0_9, %c0_10], %11 {strides = array<i32>} : memref<2x128xf32, #tpu.memory_space<vmem>>, vector<1x128xf32>,
    %c1 = arith.constant 1 : index
    %c0_11 = arith.constant 0 : index
    %13 = vector.load %arg5[%c1, %c0_11] : memref<2x128xf32, #tpu.memory_space<vmem>>, vector<1x128xf32>
    %14 = arith.mulf %3, %3 : vector<32x128xf32>
    %cst_12 = arith.constant dense<0.000000e+00> : vector<128xf32>
    %15 = vector.multi_reduction <add>, %14, %cst_12 [0] : vector<32x128xf32> to vector<128xf32>
    %16 = vector.shape_cast %15 : vector<128xf32> to vector<1x128xf32>
    %17 = arith.addf %13, %16 : vector<1x128xf32>
    %c1_13 = arith.constant 1 : index
    %c0_14 = arith.constant 0 : index
    %18 = vector.load %arg5[%c1_13, %c0_14] : memref<2x128xf32, #tpu.memory_space<vmem>>, vector<1x128xf32>
    tpu.vector_store %arg5[%c1_13, %c0_14], %17 {strides = array<i32>} : memref<2x128xf32, #tpu.memory_space<vmem>>, vector<1x128xf32>,
    %c0_i32_15 = arith.constant 0 : i32
    %19 = arith.cmpi eq, %arg0, %c0_i32_15 : i32
    %20 = arith.extui %19 : i1 to i32
    %c0_i32_16 = arith.constant 0 : i32
    %21 = arith.cmpi ne, %20, %c0_i32_16 : i32
    scf.if %21 {
      %c0_17 = arith.constant 0 : index
      %c0_18 = arith.constant 0 : index
      %22 = vector.load %arg5[%c0_17, %c0_18] : memref<2x128xf32, #tpu.memory_space<vmem>>, vector<1x128xf32>
      %cst_19 = arith.constant 3.125000e-02 : f32
      %23 = vector.broadcast %cst_19 : f32 to vector<1x128xf32>
      %24 = arith.mulf %22, %23 : vector<1x128xf32>
      %c1_20 = arith.constant 1 : index
      %c0_21 = arith.constant 0 : index
      %25 = vector.load %arg5[%c1_20, %c0_21] : memref<2x128xf32, #tpu.memory_space<vmem>>, vector<1x128xf32>
      %cst_22 = arith.constant 3.125000e-02 : f32
      %26 = vector.broadcast %cst_22 : f32 to vector<1x128xf32>
      %27 = arith.mulf %25, %26 : vector<1x128xf32>
      %28 = arith.mulf %24, %24 : vector<1x128xf32>
      %29 = arith.subf %27, %28 : vector<1x128xf32>
      %cst_23 = arith.constant 0.000000e+00 : f32
      %30 = vector.broadcast %cst_23 : f32 to vector<1x128xf32>
      %31 = arith.maximumf %29, %30 : vector<1x128xf32>
      %c0_24 = arith.constant 0 : index
      %c0_25 = arith.constant 0 : index
      %32 = vector.load %arg3[%c0_24, %c0_25] : memref<2x128xf32, #tpu.memory_space<vmem>>, vector<1x128xf32>
      %cst_26 = arith.constant 9.99999974E-6 : f32
      %33 = vector.broadcast %cst_26 : f32 to vector<1x128xf32>
      %34 = arith.addf %31, %33 : vector<1x128xf32>
      %35 = math.rsqrt %34 : vector<1x128xf32>
      %36 = arith.mulf %32, %35 : vector<1x128xf32>
      %c0_27 = arith.constant 0 : index
      %c0_28 = arith.constant 0 : index
      %37 = vector.load %arg5[%c0_27, %c0_28] : memref<2x128xf32, #tpu.memory_space<vmem>>, vector<1x128xf32>
      tpu.vector_store %arg5[%c0_27, %c0_28], %36 {strides = array<i32>} : memref<2x128xf32, #tpu.memory_space<vmem>>, vector<1x128xf32>,
      %c1_29 = arith.constant 1 : index
      %c0_30 = arith.constant 0 : index
      %38 = vector.load %arg3[%c1_29, %c0_30] : memref<2x128xf32, #tpu.memory_space<vmem>>, vector<1x128xf32>
      %39 = arith.mulf %24, %36 : vector<1x128xf32>
      %40 = arith.subf %38, %39 : vector<1x128xf32>
      %c1_31 = arith.constant 1 : index
      %c0_32 = arith.constant 0 : index
      %41 = vector.load %arg5[%c1_31, %c0_32] : memref<2x128xf32, #tpu.memory_space<vmem>>, vector<1x128xf32>
      tpu.vector_store %arg5[%c1_31, %c0_32], %40 {strides = array<i32>} : memref<2x128xf32, #tpu.memory_space<vmem>>, vector<1x128xf32>,
    } else {
    }
    return
  }
  func.func @transform_0(%arg0: i32) -> (i32, i32) {
    %c0_i32 = arith.constant 0 : i32
    %c0_i32_0 = arith.constant 0 : i32
    return %arg0, %c0_i32 : i32, i32
  }
  func.func @transform_1(%arg0: i32) -> (i32, i32) {
    %c0_i32 = arith.constant 0 : i32
    %c0_i32_0 = arith.constant 0 : i32
    %c0_i32_1 = arith.constant 0 : i32
    return %c0_i32, %c0_i32_0 : i32, i32
  }
  func.func @transform_2(%arg0: i32) -> (i32, i32) {
    %c0_i32 = arith.constant 0 : i32
    %c0_i32_0 = arith.constant 0 : i32
    %c0_i32_1 = arith.constant 0 : i32
    return %c0_i32, %c0_i32_0 : i32, i32
  }
  func.func @transform_3(%arg0: i32) -> (i32, i32) {
    %c0_i32 = arith.constant 0 : i32
    %c0_i32_0 = arith.constant 0 : i32
    return %arg0, %c0_i32 : i32, i32
  }
  func.func @transform_4(%arg0: i32) -> (i32, i32) {
    %c0_i32 = arith.constant 0 : i32
    %c0_i32_0 = arith.constant 0 : i32
    %c0_i32_1 = arith.constant 0 : i32
    return %c0_i32, %c0_i32_0 : i32, i32
  }
}

module attributes {stable_mosaic.version = 11 : i64} {
  func.func @_bn_linear_stats_kernel(%arg0: i32, %arg1: memref<32x128xf32, #tpu.memory_space<vmem>>, %arg2: memref<2x128xf32, #tpu.memory_space<vmem>>, %arg3: memref<128x128xbf16, #tpu.memory_space<vmem>>, %arg4: memref<2x128xf32, #tpu.memory_space<vmem>>, %arg5: memref<32x128xf32, #tpu.memory_space<vmem>>, %arg6: memref<2x128xf32, #tpu.memory_space<vmem>>) attributes {dimension_semantics = [#tpu.dimension_semantics<arbitrary>], iteration_bounds = array<i64: 1>, scalar_prefetch = 0 : i64, scratch_operands = 0 : i64, tpu.core_type = #tpu.core_type<tc>, window_params = [{transform_indices = @transform_0, window_bounds = array<i64: 32, 128>}, {pipeline_mode = #tpu.pipeline_mode<synchronous>, transform_indices = @transform_1, window_bounds = array<i64: 2, 128>}, {pipeline_mode = #tpu.pipeline_mode<synchronous>, transform_indices = @transform_2, window_bounds = array<i64: 128, 128>}, {pipeline_mode = #tpu.pipeline_mode<synchronous>, transform_indices = @transform_3, window_bounds = array<i64: 2, 128>}, {transform_indices = @transform_4, window_bounds = array<i64: 32, 128>}, {pipeline_mode = #tpu.pipeline_mode<synchronous>, transform_indices = @transform_5, window_bounds = array<i64: 2, 128>}]} {
    %c0 = arith.constant 0 : index
    %c0_0 = arith.constant 0 : index
    %0 = vector.load %arg2[%c0, %c0_0] : memref<2x128xf32, #tpu.memory_space<vmem>>, vector<1x128xf32>
    %c1 = arith.constant 1 : index
    %c0_1 = arith.constant 0 : index
    %1 = vector.load %arg2[%c1, %c0_1] : memref<2x128xf32, #tpu.memory_space<vmem>>, vector<1x128xf32>
    %c0_2 = arith.constant 0 : index
    %c0_3 = arith.constant 0 : index
    %2 = vector.load %arg1[%c0_2, %c0_3] : memref<32x128xf32, #tpu.memory_space<vmem>>, vector<32x128xf32>
    %3 = vector.broadcast %0 : vector<1x128xf32> to vector<32x128xf32>
    %4 = arith.mulf %2, %3 : vector<32x128xf32>
    %5 = vector.broadcast %1 : vector<1x128xf32> to vector<32x128xf32>
    %6 = arith.addf %4, %5 : vector<32x128xf32>
    %cst = arith.constant 0.000000e+00 : f32
    %7 = vector.broadcast %cst : f32 to vector<32x128xf32>
    %8 = arith.maximumf %6, %7 : vector<32x128xf32>
    %9 = arith.truncf %8 : vector<32x128xf32> to vector<32x128xbf16>
    %c0_4 = arith.constant 0 : index
    %c0_5 = arith.constant 0 : index
    %10 = vector.load %arg3[%c0_4, %c0_5] : memref<128x128xbf16, #tpu.memory_space<vmem>>, vector<128x128xbf16>
    %cst_6 = arith.constant dense<0.000000e+00> : vector<32x128xf32>
    %11 = tpu.matmul %9, %10, %cst_6 {dimension_numbers = #tpu.dot_dimension_numbers<[1], [0], [0], [1], [0, 0, 1, 1], [], []>} : vector<32x128xbf16>, vector<128x128xbf16>, vector<32x128xf32> -> vector<32x128xf32>
    %c0_7 = arith.constant 0 : index
    %c0_8 = arith.constant 0 : index
    %12 = vector.load %arg5[%c0_7, %c0_8] : memref<32x128xf32, #tpu.memory_space<vmem>>, vector<32x128xf32>
    tpu.vector_store %arg5[%c0_7, %c0_8], %11 {strides = array<i32>} : memref<32x128xf32, #tpu.memory_space<vmem>>, vector<32x128xf32>,
    %c0_i32 = arith.constant 0 : i32
    %13 = arith.cmpi eq, %arg0, %c0_i32 : i32
    %14 = arith.extui %13 : i1 to i32
    %c0_i32_9 = arith.constant 0 : i32
    %15 = arith.cmpi ne, %14, %c0_i32_9 : i32
    scf.if %15 {
      %cst_22 = arith.constant 0.000000e+00 : f32
      %30 = vector.broadcast %cst_22 : f32 to vector<2x128xf32>
      %c0_23 = arith.constant 0 : index
      %c0_24 = arith.constant 0 : index
      %31 = vector.load %arg6[%c0_23, %c0_24] : memref<2x128xf32, #tpu.memory_space<vmem>>, vector<2x128xf32>
      tpu.vector_store %arg6[%c0_23, %c0_24], %30 {strides = array<i32>} : memref<2x128xf32, #tpu.memory_space<vmem>>, vector<2x128xf32>,
    } else {
    }
    %c0_10 = arith.constant 0 : index
    %c0_11 = arith.constant 0 : index
    %16 = vector.load %arg6[%c0_10, %c0_11] : memref<2x128xf32, #tpu.memory_space<vmem>>, vector<1x128xf32>
    %cst_12 = arith.constant dense<0.000000e+00> : vector<128xf32>
    %17 = vector.multi_reduction <add>, %11, %cst_12 [0] : vector<32x128xf32> to vector<128xf32>
    %18 = vector.shape_cast %17 : vector<128xf32> to vector<1x128xf32>
    %19 = arith.addf %16, %18 : vector<1x128xf32>
    %c0_13 = arith.constant 0 : index
    %c0_14 = arith.constant 0 : index
    %20 = vector.load %arg6[%c0_13, %c0_14] : memref<2x128xf32, #tpu.memory_space<vmem>>, vector<1x128xf32>
    tpu.vector_store %arg6[%c0_13, %c0_14], %19 {strides = array<i32>} : memref<2x128xf32, #tpu.memory_space<vmem>>, vector<1x128xf32>,
    %c1_15 = arith.constant 1 : index
    %c0_16 = arith.constant 0 : index
    %21 = vector.load %arg6[%c1_15, %c0_16] : memref<2x128xf32, #tpu.memory_space<vmem>>, vector<1x128xf32>
    %22 = arith.mulf %11, %11 : vector<32x128xf32>
    %cst_17 = arith.constant dense<0.000000e+00> : vector<128xf32>
    %23 = vector.multi_reduction <add>, %22, %cst_17 [0] : vector<32x128xf32> to vector<128xf32>
    %24 = vector.shape_cast %23 : vector<128xf32> to vector<1x128xf32>
    %25 = arith.addf %21, %24 : vector<1x128xf32>
    %c1_18 = arith.constant 1 : index
    %c0_19 = arith.constant 0 : index
    %26 = vector.load %arg6[%c1_18, %c0_19] : memref<2x128xf32, #tpu.memory_space<vmem>>, vector<1x128xf32>
    tpu.vector_store %arg6[%c1_18, %c0_19], %25 {strides = array<i32>} : memref<2x128xf32, #tpu.memory_space<vmem>>, vector<1x128xf32>,
    %c0_i32_20 = arith.constant 0 : i32
    %27 = arith.cmpi eq, %arg0, %c0_i32_20 : i32
    %28 = arith.extui %27 : i1 to i32
    %c0_i32_21 = arith.constant 0 : i32
    %29 = arith.cmpi ne, %28, %c0_i32_21 : i32
    scf.if %29 {
      %c0_22 = arith.constant 0 : index
      %c0_23 = arith.constant 0 : index
      %30 = vector.load %arg6[%c0_22, %c0_23] : memref<2x128xf32, #tpu.memory_space<vmem>>, vector<1x128xf32>
      %cst_24 = arith.constant 3.125000e-02 : f32
      %31 = vector.broadcast %cst_24 : f32 to vector<1x128xf32>
      %32 = arith.mulf %30, %31 : vector<1x128xf32>
      %c1_25 = arith.constant 1 : index
      %c0_26 = arith.constant 0 : index
      %33 = vector.load %arg6[%c1_25, %c0_26] : memref<2x128xf32, #tpu.memory_space<vmem>>, vector<1x128xf32>
      %cst_27 = arith.constant 3.125000e-02 : f32
      %34 = vector.broadcast %cst_27 : f32 to vector<1x128xf32>
      %35 = arith.mulf %33, %34 : vector<1x128xf32>
      %36 = arith.mulf %32, %32 : vector<1x128xf32>
      %37 = arith.subf %35, %36 : vector<1x128xf32>
      %cst_28 = arith.constant 0.000000e+00 : f32
      %38 = vector.broadcast %cst_28 : f32 to vector<1x128xf32>
      %39 = arith.maximumf %37, %38 : vector<1x128xf32>
      %c0_29 = arith.constant 0 : index
      %c0_30 = arith.constant 0 : index
      %40 = vector.load %arg4[%c0_29, %c0_30] : memref<2x128xf32, #tpu.memory_space<vmem>>, vector<1x128xf32>
      %cst_31 = arith.constant 9.99999974E-6 : f32
      %41 = vector.broadcast %cst_31 : f32 to vector<1x128xf32>
      %42 = arith.addf %39, %41 : vector<1x128xf32>
      %43 = math.rsqrt %42 : vector<1x128xf32>
      %44 = arith.mulf %40, %43 : vector<1x128xf32>
      %c0_32 = arith.constant 0 : index
      %c0_33 = arith.constant 0 : index
      %45 = vector.load %arg6[%c0_32, %c0_33] : memref<2x128xf32, #tpu.memory_space<vmem>>, vector<1x128xf32>
      tpu.vector_store %arg6[%c0_32, %c0_33], %44 {strides = array<i32>} : memref<2x128xf32, #tpu.memory_space<vmem>>, vector<1x128xf32>,
      %c1_34 = arith.constant 1 : index
      %c0_35 = arith.constant 0 : index
      %46 = vector.load %arg4[%c1_34, %c0_35] : memref<2x128xf32, #tpu.memory_space<vmem>>, vector<1x128xf32>
      %47 = arith.mulf %32, %44 : vector<1x128xf32>
      %48 = arith.subf %46, %47 : vector<1x128xf32>
      %c1_36 = arith.constant 1 : index
      %c0_37 = arith.constant 0 : index
      %49 = vector.load %arg6[%c1_36, %c0_37] : memref<2x128xf32, #tpu.memory_space<vmem>>, vector<1x128xf32>
      tpu.vector_store %arg6[%c1_36, %c0_37], %48 {strides = array<i32>} : memref<2x128xf32, #tpu.memory_space<vmem>>, vector<1x128xf32>,
    } else {
    }
    return
  }
  func.func @transform_0(%arg0: i32) -> (i32, i32) {
    %c0_i32 = arith.constant 0 : i32
    %c0_i32_0 = arith.constant 0 : i32
    return %arg0, %c0_i32 : i32, i32
  }
  func.func @transform_1(%arg0: i32) -> (i32, i32) {
    %c0_i32 = arith.constant 0 : i32
    %c0_i32_0 = arith.constant 0 : i32
    %c0_i32_1 = arith.constant 0 : i32
    return %c0_i32, %c0_i32_0 : i32, i32
  }
  func.func @transform_2(%arg0: i32) -> (i32, i32) {
    %c0_i32 = arith.constant 0 : i32
    %c0_i32_0 = arith.constant 0 : i32
    %c0_i32_1 = arith.constant 0 : i32
    return %c0_i32, %c0_i32_0 : i32, i32
  }
  func.func @transform_3(%arg0: i32) -> (i32, i32) {
    %c0_i32 = arith.constant 0 : i32
    %c0_i32_0 = arith.constant 0 : i32
    %c0_i32_1 = arith.constant 0 : i32
    return %c0_i32, %c0_i32_0 : i32, i32
  }
  func.func @transform_4(%arg0: i32) -> (i32, i32) {
    %c0_i32 = arith.constant 0 : i32
    %c0_i32_0 = arith.constant 0 : i32
    return %arg0, %c0_i32 : i32, i32
  }
  func.func @transform_5(%arg0: i32) -> (i32, i32) {
    %c0_i32 = arith.constant 0 : i32
    %c0_i32_0 = arith.constant 0 : i32
    %c0_i32_1 = arith.constant 0 : i32
    return %c0_i32, %c0_i32_0 : i32, i32
  }
}

</mosaic_0001>

<bundles_post_ra>
// kernel: npid_forward.7
= control target key start
LH: loop header
LB: loop body
LE: loop exit
PB: predicated region body
PF: predicated region fallthrough
CT: control target
= control target key end

     0   :  { %s337_s2 = inlined_call_operand.vmem [shape: bf16[128,128], index: 2, kind: input, shape index: {}]   ;;  %s338_s0 = inlined_call_operand.vmem [shape: f32[32,128], index: 0, kind: input, shape index: {}]   ;;  %s339_s1 = inlined_call_operand.vmem [shape: f32[2,128], index: 1, kind: input, shape index: {}]   ;;  %s340_s3 = inlined_call_operand.vmem [shape: f32[1,128], index: 3, kind: input, shape index: {}]   ;;  %s341_s4 = inlined_call_operand.vmem [shape: f32[32,128], index: 4, kind: output, shape index: {}]  }
   0x1   :  { %v239_v0 = vld [vmem:[%s337_s2] sm:$0xff]   ;;  %v240_v1 = vld [vmem:[%s337_s2 + $0x8] sm:$0xff]   ;;  %v241_v2 = vld [vmem:[%s337_s2 + $0x10] sm:$0xff]  }
   0x2   :  { %219 = vmatprep.subr.bf16.mxu0 %v239_v0  ;;  %v242_v3 = vld [vmem:[%s337_s2 + $0x18] sm:$0xff]   ;;  %v198_v4 = vld [vmem:[%s339_s1] ss:$0 sm:$0xff]  ;;  %v199_v5 = vld [vmem:[%s339_s1 + $0x1] ss:$0 sm:$0xff] }
   0x3   :  { %220 = vmatpush3.bf16.msra.mxu0 %v239_v0  ;;  %v20_v6 = vld [vmem:[%s338_s0] sm:$0xff]  ;;  %v21_v7 = vld [vmem:[%s338_s0 + $0x8] sm:$0xff]  ;;  %v22_v15 = vld [vmem:[%s338_s0 + $0x10] sm:$0xff] }
   0x4   :  { %221 = vmatprep.subr.bf16.mxu0 %v240_v1  ;;  %v28_v8 = vmul.f32 %v198_v4, %v20_v6  ;;  %v29_v9 = vmul.f32 %v198_v4, %v21_v7  ;;  %v243_v11 = vld [vmem:[%s337_s2 + $0x20] sm:$0xff]   ;;  %v23_v16 = vld [vmem:[%s338_s0 + $0x18] sm:$0xff]  ;;  %v244_v17 = vld [vmem:[%s337_s2 + $0x28] sm:$0xff]   ;;  %v30_v19 = vmul.f32 %v198_v4, %v22_v15 }
   0x5   :  { %v31_v20 = vmul.f32 %v198_v4, %v23_v16  ;;  %v245_v21 = vld [vmem:[%s337_s2 + $0x30] sm:$0xff]   ;;  %v246_v24 = vld [vmem:[%s337_s2 + $0x38] sm:$0xff]   ;;  %v200_v28 = vld [vmem:[%s340_s3] ss:$0 sm:$0xff] }
   0x6   :  { %v36_v10 = vadd.f32 %v199_v5, %v28_v8  ;;  %v37_v12 = vadd.f32 %v199_v5, %v29_v9  ;;  %v38_v22 = vadd.f32 %v199_v5, %v30_v19 }
   0x7   :  { %222 = vmatpush3.bf16.msra.mxu0 %v240_v1  ;;  %v39_v23 = vadd.f32 %v199_v5, %v31_v20 }
   0x8   :  { %223 = vmatprep.subr.bf16.mxu0 %v241_v2  ;;  %v40_v13 = vmax.f32 %v36_v10, 0.0  ;;  %v41_v14 = vmax.f32 %v37_v12, 0.0  ;;  %v42_v25 = vmax.f32 %v38_v22, 0.0 }
   0x9   :  { %v43_v26 = vmax.f32 %v39_v23, 0.0 }
   0xa   :  { %v44_v18 = vpack.c.bf16 %v41_v14, %v40_v13 }
   0xb   :  { %224 = vmatpush3.bf16.msra.mxu0 %v241_v2  ;;  %v45_v27 = vpack.c.bf16 %v43_v26, %v42_v25 }
   0xc   :  { %225 = vmatprep.subr.bf16.mxu0 %v242_v3  ;;  %235 = vmatprep.mubr.bf16.mxu0 %v44_v18 }
   0xf   :  { %226 = vmatpush3.bf16.msra.mxu0 %v242_v3 }
  0x10   :  { %227 = vmatprep.subr.bf16.mxu0 %v243_v11 }
  0x13   :  { %228 = vmatpush3.bf16.msra.mxu0 %v243_v11 }
  0x14   :  { %229 = vmatprep.subr.bf16.mxu0 %v244_v17 }
  0x17   :  { %230 = vmatpush3.bf16.msra.mxu0 %v244_v17 }
  0x18   :  { %231 = vmatprep.subr.bf16.mxu0 %v245_v21 }
  0x1b   :  { %232 = vmatpush3.bf16.msra.mxu0 %v245_v21 }
  0x1c   :  { %233 = vmatprep.subr.bf16.mxu0 %v246_v24 }
  0x1f   :  { %234 = vmatpush3.bf16.msra.mxu0 %v246_v24 }
  0x22   :  { %236 = vmatmul.mubr.bf16.vlgmr.msra.gmra.mrb[0].mxu0 %v45_v27 }
  0xf5   :  { %v237_v29 = vpop.f32.mrb[0].mxu0 }
  0xf6   :  { %v160_v30 = vadd.f32 %v237_v29, %v200_v28  ;;  %v151_v31 = vpop.f32.mrb[1].mxu0 }
  0xf7   :  { %v152_v32 = vadd.f32 %v200_v28, %v151_v31  ;;  %v238_v33 = vpop.f32.mrb[2].mxu0 }
  0xf8   :  { %v163_v34 = vadd.f32 %v238_v33, %v200_v28  ;;  %v154_v35 = vpop.f32.mrb[3].mxu0  ;;  %v168_v36 = vmul.f32 %v160_v30, %v160_v30 }
  0xf9   :  { %v155_v37 = vadd.f32 %v200_v28, %v154_v35  ;;  %v166_v38 = vmul.f32 %v152_v32, %v152_v32 }
  0xfa   :  { %174 = vadd.xlane.f32.xlu1 %v168_v36  ;;  %v169_v39 = vmul.f32 %v163_v34, %v163_v34 }
  0xfb   :  { %170 = vadd.xlane.f32.xlu0 %v166_v38  ;;  %v167_v40 = vmul.f32 %v155_v37, %v155_v37 }
  0xfe   :  { %176 = vadd.xlane.f32.xlu1 %v169_v39 }
  0xff   :  { %172 = vadd.xlane.f32.xlu0 %v167_v40 }
 0x187   :  { %v175_v41 = vpop.xlane.xlu1 %174 }
 0x188   :  { %v180_v42 = vmax.f32 %v175_v41, 1e-24  ;;  %v171_v43 = vpop.xlane.xlu0 %170 }
 0x189   :  { %v178_v44 = vmax.f32 %v171_v43, 1e-24 }
 0x18a   :  { %247 = vrsqrt.f32 %v180_v42 }
 0x18b   :  { %249 = vrsqrt.f32 %v178_v44  ;;  %v177_v45 = vpop.xlane.xlu1 %176 }
 0x18c   :  { %v181_v46 = vmax.f32 %v177_v45, 1e-24  ;;  %v173_v47 = vpop.xlane.xlu0 %172 }
 0x18d   :  { %v179_v48 = vmax.f32 %v173_v47, 1e-24 }
 0x18e   :  { %251 = vrsqrt.f32 %v181_v46 }
 0x18f   :  { %253 = vrsqrt.f32 %v179_v48 }
 0x194   :  { %v248_v49 = vpop.eup %247 }
 0x195   :  { %v250_v50 = vpop.eup %249  ;;  %v188_v51 = vmul.f32 %v248_v49, %v160_v30 }
 0x196   :  { %v186_v52 = vmul.f32 %v250_v50, %v152_v32 }
 0x197   :  { %192 = vst [vmem:[%s341_s4 + $0x10] sm:$0xff] %v188_v51 }
 0x198   :  { %v252_v53 = vpop.eup %251  ;;  %190 = vst [vmem:[%s341_s4] sm:$0xff] %v186_v52 }
 0x199   :  { %v254_v54 = vpop.eup %253  ;;  %v189_v55 = vmul.f32 %v252_v53, %v163_v34 }
 0x19a   :  { %v187_v56 = vmul.f32 %v254_v54, %v155_v37 }
 0x19b   :  { %193 = vst [vmem:[%s341_s4 + $0x18] sm:$0xff] %v189_v55 }
 0x19c   :  { %191 = vst [vmem:[%s341_s4 + $0x8] sm:$0xff] %v187_v56 }

// kernel: npid_forward.4
= control target key start
LH: loop header
LB: loop body
LE: loop exit
PB: predicated region body
PF: predicated region fallthrough
CT: control target
= control target key end

     0   :  { %v249_v14 = vmov 0.0   ;;  %s356_s1 = inlined_call_operand.vmem [shape: bf16[128,128], index: 1, kind: input, shape index: {}]   ;;  %s357_s0 = inlined_call_operand.vmem [shape: f32[32,128], index: 0, kind: input, shape index: {}]   ;;  %s358_s4 = inlined_call_operand.vmem [shape: f32[2,128], index: 4, kind: output, shape index: {1}]   ;;  %s359_s3 = inlined_call_operand.vmem [shape: f32[32,128], index: 3, kind: output, shape index: {0}]   ;;  %s360_s2 = inlined_call_operand.vmem [shape: f32[2,128], index: 2, kind: input, shape index: {}]  }
   0x1   :  { %v239_v0 = vld [vmem:[%s356_s1] sm:$0xff]   ;;  %v240_v1 = vld [vmem:[%s356_s1 + $0x8] sm:$0xff]   ;;  %v241_v2 = vld [vmem:[%s356_s1 + $0x10] sm:$0xff]   ;;  %144 = vst [vmem:[%s358_s4] sm:$0x3] %v249_v14 }
   0x2   :  { %218 = vmatprep.subr.bf16.mxu0 %v239_v0  ;;  %v242_v3 = vld [vmem:[%s356_s1 + $0x18] sm:$0xff]   ;;  %v17_v4 = vld [vmem:[%s357_s0] sm:$0xff]  ;;  %v18_v5 = vld [vmem:[%s357_s0 + $0x8] sm:$0xff] }
   0x3   :  { %219 = vmatpush3.bf16.msra.mxu0 %v239_v0  ;;  %v21_v6 = vpack.c.bf16 %v18_v5, %v17_v4  ;;  %v243_v7 = vld [vmem:[%s356_s1 + $0x20] sm:$0xff]   ;;  %v244_v8 = vld [vmem:[%s356_s1 + $0x28] sm:$0xff]   ;;  %v245_v9 = vld [vmem:[%s356_s1 + $0x30] sm:$0xff]  }
   0x4   :  { %220 = vmatprep.subr.bf16.mxu0 %v240_v1  ;;  %v246_v10 = vld [vmem:[%s356_s1 + $0x38] sm:$0xff]   ;;  %v19_v11 = vld [vmem:[%s357_s0 + $0x10] sm:$0xff]  ;;  %v183_v53 = vld [vmem:[%s360_s2] sm:$0x1] }
   0x5   :  { %234 = vmatprep.mubr.bf16.mxu0 %v21_v6  ;;  %v20_v12 = vld [vmem:[%s357_s0 + $0x18] sm:$0xff]  ;;  %v188_v56 = vld [vmem:[%s360_s2 + $0x1] sm:$0x1] }
   0x6   :  { %v22_v13 = vpack.c.bf16 %v20_v12, %v19_v11 }
   0x7   :  { %221 = vmatpush3.bf16.msra.mxu0 %v240_v1 }
   0x8   :  { %222 = vmatprep.subr.bf16.mxu0 %v241_v2  ;;  %v145_v38 = vld [vmem:[%s358_s4] sm:$0x1]  ;;  %v157_v41 = vld [vmem:[%s358_s4 + $0x1] sm:$0x1] }
   0xb   :  { %223 = vmatpush3.bf16.msra.mxu0 %v241_v2 }
   0xc   :  { %224 = vmatprep.subr.bf16.mxu0 %v242_v3 }
   0xf   :  { %225 = vmatpush3.bf16.msra.mxu0 %v242_v3 }
  0x10   :  { %226 = vmatprep.subr.bf16.mxu0 %v243_v7 }
  0x13   :  { %227 = vmatpush3.bf16.msra.mxu0 %v243_v7 }
  0x14   :  { %228 = vmatprep.subr.bf16.mxu0 %v244_v8 }
  0x17   :  { %229 = vmatpush3.bf16.msra.mxu0 %v244_v8 }
  0x18   :  { %230 = vmatprep.subr.bf16.mxu0 %v245_v9 }
  0x1b   :  { %231 = vmatpush3.bf16.msra.mxu0 %v245_v9 }
  0x1c   :  { %232 = vmatprep.subr.bf16.mxu0 %v246_v10 }
  0x1f   :  { %233 = vmatpush3.bf16.msra.mxu0 %v246_v10 }
  0x22   :  { %235 = vmatmul.mubr.bf16.vlgmr.msra.gmra.mrb[0].mxu0 %v22_v13 }
  0xf5   :  { %v236_v15 = vpop.f32.mrb[0].mxu0 }
  0xf6   :  { %138 = vst [vmem:[%s359_s3 + $0x10] sm:$0xff] %v236_v15  ;;  %v121_v16 = vpop.f32.mrb[1].mxu0  ;;  %v160_v22 = vmul.f32 %v236_v15, %v236_v15 }
  0xf7   :  { %136 = vst [vmem:[%s359_s3] sm:$0xff] %v121_v16  ;;  %v237_v17 = vpop.f32.mrb[2].mxu0  ;;  %v158_v19 = vmul.f32 %v121_v16, %v121_v16 }
  0xf8   :  { %139 = vst [vmem:[%s359_s3 + $0x18] sm:$0xff] %v237_v17  ;;  %v124_v18 = vpop.f32.mrb[3].mxu0  ;;  %v161_v25 = vmul.f32 %v237_v17, %v237_v17 }
  0xf9   :  { %137 = vst [vmem:[%s359_s3 + $0x8] sm:$0xff] %v124_v18  ;;  %v146_v20 = vadd.f32 %v124_v18, %v121_v16  ;;  %v159_v21 = vmul.f32 %v124_v18, %v124_v18 }
  0xfb   :  { %v147_v23 = vadd.f32 %v236_v15, %v146_v20  ;;  %v162_v24 = vadd.f32 %v159_v21, %v158_v19 }
  0xfd   :  { %v148_v26 = vadd.f32 %v237_v17, %v147_v23  ;;  %v163_v27 = vadd.f32 %v162_v24, %v160_v22 }
  0xff   :  { %v149_v28 = vrot.slane %v148_v26, 4  ;;  %v164_v29 = vadd.f32 %v163_v27, %v161_v25 }
 0x101   :  { %v150_v30 = vadd.f32 %v149_v28, %v148_v26  ;;  %v165_v31 = vrot.slane %v164_v29, 4 }
 0x103   :  { %v151_v32 = vrot.slane %v150_v30, 2  ;;  %v166_v33 = vadd.f32 %v165_v31, %v164_v29 }
 0x105   :  { %v152_v34 = vadd.f32 %v151_v32, %v150_v30  ;;  %v167_v35 = vrot.slane %v166_v33, 2 }
 0x107   :  { %v153_v36 = vrot.slane %v152_v34, 1  ;;  %v168_v37 = vadd.f32 %v167_v35, %v166_v33 }
 0x109   :  { %v154_v39 = vadd.f32 %v153_v36, %v152_v34  ;;  %v169_v40 = vrot.slane %v168_v37, 1 }
 0x10b   :  { %v155_v42 = vadd.f32 %v154_v39, %v145_v38  ;;  %v170_v43 = vadd.f32 %v169_v40, %v168_v37 }
 0x10d   :  { %156 = vst [vmem:[%s358_s4] sm:$0x1] %v155_v42  ;;  %v171_v44 = vadd.f32 %v170_v43, %v157_v41 }
 0x10f   :  { %172 = vst [vmem:[%s358_s4 + $0x1] sm:$0x1] %v171_v44 }
 0x114   :  { %v176_v45 = vld [vmem:[%s358_s4] sm:$0x1] }
 0x115   :  { %v177_v46 = vmul.f32 0.03125, %v176_v45 }
 0x116   :  { %v178_v47 = vld [vmem:[%s358_s4 + $0x1] sm:$0x1] }
 0x117   :  { %v179_v48 = vmul.f32 0.03125, %v178_v47  ;;  %v180_v49 = vmul.f32 %v177_v46, %v177_v46 }
 0x119   :  { %v181_v50 = vsub.f32 %v179_v48, %v180_v49 }
 0x11b   :  { %v182_v51 = vmax.f32 %v181_v50, 0.0 }
 0x11d   :  { %v184_v52 = vadd.f32 1e-05, %v182_v51 }
 0x11f   :  { %247 = vrsqrt.f32 %v184_v52 }
 0x129   :  { %v248_v54 = vpop.eup %247 }
 0x12a   :  { %v186_v55 = vmul.f32 %v248_v54, %v183_v53 }
 0x12c   :  { %187 = vst [vmem:[%s358_s4] sm:$0x1] %v186_v55  ;;  %v189_v57 = vmul.f32 %v186_v55, %v177_v46 }
 0x12e   :  { %v190_v58 = vsub.f32 %v188_v56, %v189_v57 }
 0x130   :  { %191 = vst [vmem:[%s358_s4 + $0x1] sm:$0x1] %v190_v58 }

// kernel: npid_forward.5
= control target key start
LH: loop header
LB: loop body
LE: loop exit
PB: predicated region body
PF: predicated region fallthrough
CT: control target
= control target key end

     0   :  { %v276_v28 = vmov 0.0   ;;  %s394_s2 = inlined_call_operand.vmem [shape: bf16[128,128], index: 2, kind: input, shape index: {}]   ;;  %s395_s0 = inlined_call_operand.vmem [shape: f32[32,128], index: 0, kind: input, shape index: {}]   ;;  %s396_s1 = inlined_call_operand.vmem [shape: f32[2,128], index: 1, kind: input, shape index: {}]   ;;  %s397_s5 = inlined_call_operand.vmem [shape: f32[2,128], index: 5, kind: output, shape index: {1}]   ;;  %s398_s4 = inlined_call_operand.vmem [shape: f32[32,128], index: 4, kind: output, shape index: {0}]   ;;  %s399_s3 = inlined_call_operand.vmem [shape: f32[2,128], index: 3, kind: input, shape index: {}]  }
   0x1   :  { %v266_v0 = vld [vmem:[%s394_s2] sm:$0xff]   ;;  %v267_v1 = vld [vmem:[%s394_s2 + $0x8] sm:$0xff]   ;;  %v268_v2 = vld [vmem:[%s394_s2 + $0x10] sm:$0xff]   ;;  %169 = vst [vmem:[%s397_s5] sm:$0x3] %v276_v28 }
   0x2   :  { %245 = vmatprep.subr.bf16.mxu0 %v266_v0  ;;  %v269_v3 = vld [vmem:[%s394_s2 + $0x18] sm:$0xff]   ;;  %v225_v4 = vld [vmem:[%s396_s1] ss:$0 sm:$0xff]  ;;  %v226_v5 = vld [vmem:[%s396_s1 + $0x1] ss:$0 sm:$0xff] }
   0x3   :  { %246 = vmatpush3.bf16.msra.mxu0 %v266_v0  ;;  %v22_v6 = vld [vmem:[%s395_s0] sm:$0xff]  ;;  %v23_v7 = vld [vmem:[%s395_s0 + $0x8] sm:$0xff]  ;;  %v24_v15 = vld [vmem:[%s395_s0 + $0x10] sm:$0xff] }
   0x4   :  { %247 = vmatprep.subr.bf16.mxu0 %v267_v1  ;;  %v30_v8 = vmul.f32 %v225_v4, %v22_v6  ;;  %v31_v9 = vmul.f32 %v225_v4, %v23_v7  ;;  %v270_v11 = vld [vmem:[%s394_s2 + $0x20] sm:$0xff]   ;;  %v25_v16 = vld [vmem:[%s395_s0 + $0x18] sm:$0xff]  ;;  %v271_v17 = vld [vmem:[%s394_s2 + $0x28] sm:$0xff]   ;;  %v32_v19 = vmul.f32 %v225_v4, %v24_v15 }
   0x5   :  { %v33_v20 = vmul.f32 %v225_v4, %v25_v16  ;;  %v272_v21 = vld [vmem:[%s394_s2 + $0x30] sm:$0xff]   ;;  %v273_v24 = vld [vmem:[%s394_s2 + $0x38] sm:$0xff]   ;;  %v213_v6 = vld [vmem:[%s399_s3 + $0x1] sm:$0x1] }
   0x6   :  { %v38_v10 = vadd.f32 %v226_v5, %v30_v8  ;;  %v39_v12 = vadd.f32 %v226_v5, %v31_v9  ;;  %v40_v22 = vadd.f32 %v226_v5, %v32_v19 }
   0x7   :  { %248 = vmatpush3.bf16.msra.mxu0 %v267_v1  ;;  %v41_v23 = vadd.f32 %v226_v5, %v33_v20 }
   0x8   :  { %249 = vmatprep.subr.bf16.mxu0 %v268_v2  ;;  %v42_v13 = vmax.f32 %v38_v10, 0.0  ;;  %v43_v14 = vmax.f32 %v39_v12, 0.0  ;;  %v44_v25 = vmax.f32 %v40_v22, 0.0  ;;  %v170_v52 = vld [vmem:[%s397_s5] sm:$0x1] }
   0x9   :  { %v45_v26 = vmax.f32 %v41_v23, 0.0  ;;  %v182_v55 = vld [vmem:[%s397_s5 + $0x1] sm:$0x1] }
   0xa   :  { %v46_v18 = vpack.c.bf16 %v43_v14, %v42_v13 }
   0xb   :  { %250 = vmatpush3.bf16.msra.mxu0 %v268_v2  ;;  %v47_v27 = vpack.c.bf16 %v45_v26, %v44_v25 }
   0xc   :  { %251 = vmatprep.subr.bf16.mxu0 %v269_v3  ;;  %261 = vmatprep.mubr.bf16.mxu0 %v46_v18 }
   0xf   :  { %252 = vmatpush3.bf16.msra.mxu0 %v269_v3  ;;  %v208_v3 = vld [vmem:[%s399_s3] sm:$0x1] }
  0x10   :  { %253 = vmatprep.subr.bf16.mxu0 %v270_v11 }
  0x13   :  { %254 = vmatpush3.bf16.msra.mxu0 %v270_v11 }
  0x14   :  { %255 = vmatprep.subr.bf16.mxu0 %v271_v17 }
  0x17   :  { %256 = vmatpush3.bf16.msra.mxu0 %v271_v17 }
  0x18   :  { %257 = vmatprep.subr.bf16.mxu0 %v272_v21 }
  0x1b   :  { %258 = vmatpush3.bf16.msra.mxu0 %v272_v21 }
  0x1c   :  { %259 = vmatprep.subr.bf16.mxu0 %v273_v24 }
  0x1f   :  { %260 = vmatpush3.bf16.msra.mxu0 %v273_v24 }
  0x22   :  { %262 = vmatmul.mubr.bf16.vlgmr.msra.gmra.mrb[0].mxu0 %v47_v27 }
  0xf5   :  { %v263_v29 = vpop.f32.mrb[0].mxu0 }
  0xf6   :  { %163 = vst [vmem:[%s398_s4 + $0x10] sm:$0xff] %v263_v29  ;;  %v146_v30 = vpop.f32.mrb[1].mxu0  ;;  %v185_v36 = vmul.f32 %v263_v29, %v263_v29 }
  0xf7   :  { %161 = vst [vmem:[%s398_s4] sm:$0xff] %v146_v30  ;;  %v264_v31 = vpop.f32.mrb[2].mxu0  ;;  %v183_v33 = vmul.f32 %v146_v30, %v146_v30 }
  0xf8   :  { %164 = vst [vmem:[%s398_s4 + $0x18] sm:$0xff] %v264_v31  ;;  %v149_v32 = vpop.f32.mrb[3].mxu0  ;;  %v186_v39 = vmul.f32 %v264_v31, %v264_v31 }
  0xf9   :  { %162 = vst [vmem:[%s398_s4 + $0x8] sm:$0xff] %v149_v32  ;;  %v171_v34 = vadd.f32 %v149_v32, %v146_v30  ;;  %v184_v35 = vmul.f32 %v149_v32, %v149_v32 }
  0xfb   :  { %v172_v37 = vadd.f32 %v263_v29, %v171_v34  ;;  %v187_v38 = vadd.f32 %v184_v35, %v183_v33 }
  0xfd   :  { %v173_v40 = vadd.f32 %v264_v31, %v172_v37  ;;  %v188_v41 = vadd.f32 %v187_v38, %v185_v36 }
  0xff   :  { %v174_v42 = vrot.slane %v173_v40, 4  ;;  %v189_v43 = vadd.f32 %v188_v41, %v186_v39 }
 0x101   :  { %v175_v44 = vadd.f32 %v174_v42, %v173_v40  ;;  %v190_v45 = vrot.slane %v189_v43, 4 }
 0x103   :  { %v176_v46 = vrot.slane %v175_v44, 2  ;;  %v191_v47 = vadd.f32 %v190_v45, %v189_v43 }
 0x105   :  { %v177_v48 = vadd.f32 %v176_v46, %v175_v44  ;;  %v192_v49 = vrot.slane %v191_v47, 2 }
 0x107   :  { %v178_v50 = vrot.slane %v177_v48, 1  ;;  %v193_v51 = vadd.f32 %v192_v49, %v191_v47 }
 0x109   :  { %v179_v53 = vadd.f32 %v178_v50, %v177_v48  ;;  %v194_v54 = vrot.slane %v193_v51, 1 }
 0x10b   :  { %v180_v56 = vadd.f32 %v179_v53, %v170_v52  ;;  %v195_v57 = vadd.f32 %v194_v54, %v193_v51 }
 0x10d   :  { %181 = vst [vmem:[%s397_s5] sm:$0x1] %v180_v56  ;;  %v196_v58 = vadd.f32 %v195_v57, %v182_v55 }
 0x10f   :  { %197 = vst [vmem:[%s397_s5 + $0x1] sm:$0x1] %v196_v58 }
 0x114   :  { %v201_v59 = vld [vmem:[%s397_s5] sm:$0x1] }
 0x115   :  { %v202_v60 = vmul.f32 0.03125, %v201_v59 }
 0x116   :  { %v203_v61 = vld [vmem:[%s397_s5 + $0x1] sm:$0x1] }
 0x117   :  { %v204_v62 = vmul.f32 0.03125, %v203_v61  ;;  %v205_v63 = vmul.f32 %v202_v60, %v202_v60 }
 0x119   :  { %v206_v0 = vsub.f32 %v204_v62, %v205_v63 }
 0x11b   :  { %v207_v1 = vmax.f32 %v206_v0, 0.0 }
 0x11d   :  { %v209_v2 = vadd.f32 1e-05, %v207_v1 }
 0x11f   :  { %274 = vrsqrt.f32 %v209_v2 }
 0x129   :  { %v275_v4 = vpop.eup %274 }
 0x12a   :  { %v211_v5 = vmul.f32 %v275_v4, %v208_v3 }
 0x12c   :  { %212 = vst [vmem:[%s397_s5] sm:$0x1] %v211_v5  ;;  %v214_v7 = vmul.f32 %v211_v5, %v202_v60 }
 0x12e   :  { %v215_v8 = vsub.f32 %v213_v6, %v214_v7 }
 0x130   :  { %216 = vst [vmem:[%s397_s5 + $0x1] sm:$0x1] %v215_v8 }

</bundles_post_ra>
